<compile_context>
chip_gen: v5e
topology: v5e:2x2
jax: 0.10.0
libtpu: 0.0.40
codegen_flags: <defaults>
</compile_context>

<pallas_src>
import functools

import jax
import jax.numpy as jnp
from jax.experimental import pallas as pl
from jax.experimental.pallas import tpu as pltpu


def _cdiv(a: int, b: int) -> int:
    return (a + b - 1) // b


def _focal_loss_kernel(logits_ref, targets_ref, out_ref, acc_ref, *,
                       gamma, n_valid, tile_n, rows_per_chunk,
                       tiles_per_core, first_pad_tile, has_pad):
    p = pl.program_id(0)                    # row-range shard (v7x: one per core)
    i = pl.program_id(1)                    # tile within the shard
    gt = p * tiles_per_core + i             # global tile index
    n_chunks = tile_n // rows_per_chunk     # static

    @pl.when(i == 0)
    def _():
        acc_ref[...] = jnp.zeros_like(acc_ref)

    def chunk_sum(r0, masked):
        # One compute chunk: (rows_per_chunk, C) of the resident VMEM tile.
        x = logits_ref[pl.ds(r0, rows_per_chunk), :].astype(jnp.float32)
        t = targets_ref[pl.ds(r0, rows_per_chunk), :]          # (rows, 1) int32
        rows, c = x.shape

        # Numerically-stable log-sum-exp over classes (lane axis).
        m = jnp.max(x, axis=-1, keepdims=True)
        lse = jnp.log(jnp.sum(jnp.exp(x - m), axis=-1, keepdims=True)) + m

        # Fused target gather: select-then-reduce, no one-hot f32 temporary.
        col = jax.lax.broadcasted_iota(jnp.int32, (rows, c), 1)
        logit_t = jnp.sum(jnp.where(col == t, x, 0.0), axis=-1, keepdims=True)

        # Cross entropy, focal modulation. ce >= 0 mathematically; the clamp is
        # belt-and-braces so (1 - pt) never goes negative.
        ce = jnp.maximum(lse - logit_t, 0.0)
        pt = jnp.exp(-ce)
        omp = jnp.clip(1.0 - pt, 0.0, 1.0)

        if float(gamma) == int(gamma) and gamma >= 0:
            w = jnp.ones_like(omp)
            for _ in range(int(gamma)):       # VPU multiplies, no EUP pow
                w = w * omp
        else:
            w = omp ** gamma

        focal = w * ce                        # alpha folded into wrapper scale

        if masked:
            row = jax.lax.broadcasted_iota(jnp.int32, (rows, 1), 0)
            grow = gt * tile_n + r0 + row
            focal = jnp.where(grow < n_valid, focal, 0.0)

        return jnp.sum(focal, axis=(0, 1), keepdims=True)      # (1, 1) f32

    def tile_sum(masked):
        if n_chunks == 1:
            return chunk_sum(0, masked)

        def body(ci, carry):
            r0 = pl.multiple_of(ci * rows_per_chunk, 8)
            return carry + chunk_sum(r0, masked)

        return jax.lax.fori_loop(0, n_chunks, body,
                                 jnp.zeros((1, 1), jnp.float32))

    if has_pad:
        # Only tiles at/after first_pad_tile can contain padded rows.
        @pl.when(gt < first_pad_tile)
        def _():
            acc_ref[...] += tile_sum(False)

        @pl.when(gt >= first_pad_tile)
        def _():
            acc_ref[...] += tile_sum(True)
    else:
        acc_ref[...] += tile_sum(False)

    @pl.when(i == pl.num_programs(1) - 1)
    def _():
        out_ref[...] = acc_ref[...].reshape(1, 1, 1)


def focal_loss(logits, targets, alpha: float = 1.0, gamma: float = 2.0,
               reduction: str = "mean", tile_n: int | None = None):
    """logits: [N, C] float (f32 or bf16); targets: [N] int class indices.

    Returns a scalar f32 ('mean' or 'sum' reduction).
    """
    n, c = logits.shape
    itemsize = jnp.dtype(logits.dtype).itemsize
    sub = 8 if itemsize >= 4 else (16 if itemsize == 2 else 32)   # sublane quantum

    # ---- tile sizing (byte-based, VMEM-aware) --------------------------------
    CHUNK_ELEMS = 128 * 1024        # per-chunk compute size (bounds Mosaic unroll)
    TILE_LOGITS_BYTES = 8 << 20     # target HBM tile for the streamed logits
    BLOCK_VMEM_BUDGET = 28 << 20    # double-buffered input blocks (v7x-safe)

    rpc = max(sub, (CHUNK_ELEMS // max(c, 1)) // sub * sub)
    rpc = min(rpc, max(sub, _cdiv(n, sub) * sub))      # don't chunk past the problem

    if tile_n is not None:
        tile_n = max(sub, (int(tile_n) // sub) * sub)
        rpc = min(rpc, tile_n)
        tile_n = max(rpc, (tile_n // rpc) * rpc)
    else:
        rows_bytes = max(rpc, TILE_LOGITS_BYTES // (c * itemsize))
        # logits double-buffered + (tile_n,1) targets block padded to 128 lanes, x2.
        per_row_vmem = 2 * c * itemsize + 2 * 128 * 4
        rows_vmem = max(rpc, BLOCK_VMEM_BUDGET // per_row_vmem)
        rows_needed = _cdiv(n, rpc) * rpc
        tile_n = min((min(rows_bytes, rows_vmem) // rpc) * rpc, rows_needed)
        tile_n = max(tile_n, rpc)

    num_tiles = _cdiv(n, tile_n)
    tiles_per_core = _cdiv(num_tiles, 2)     # leading "parallel" axis of size 2
    total_tiles = 2 * tiles_per_core
    n_pad = total_tiles * tile_n
    has_pad = n_pad != n
    first_pad_tile = n // tile_n

    targets2d = targets.astype(jnp.int32).reshape(n, 1)
    if has_pad:
        # Benign padding (zero logits, class 0); masked out inside the kernel.
        logits = jnp.pad(logits, ((0, n_pad - n), (0, 0)))
        targets2d = jnp.pad(targets2d, ((0, n_pad - n), (0, 0)))

    if reduction == "mean":
        scale = float(alpha) / float(n)
    elif reduction == "sum":
        scale = float(alpha)
    else:
        raise NotImplementedError("only 'mean' and 'sum' reductions supported")

    kernel = functools.partial(
        _focal_loss_kernel, gamma=float(gamma), n_valid=int(n),
        tile_n=int(tile_n), rows_per_chunk=int(rpc),
        tiles_per_core=int(tiles_per_core),
        first_pad_tile=int(first_pad_tile), has_pad=bool(has_pad))

    # Explicit scoped-VMEM budget: input blocks (incl. lane-padded targets),
    # f32 chunk temporaries, plus headroom. Capped at 48 MiB for v7x (64 MiB/core).
    vmem_est = (2 * tile_n * c * itemsize          # logits, double-buffered
                + 2 * tile_n * 128 * 4             # (tile_n,1) targets, lane-padded, x2
                + 6 * rpc * c * 4                  # f32 chunk temporaries / spills
                + (2 << 20))
    vmem_limit = int(min(48 << 20, max(36 << 20, vmem_est + (4 << 20))))

    cost = pl.CostEstimate(
        flops=8 * n_pad * c,
        transcendentals=n_pad * (c + 2),           # exp for LSE + exp(-ce) + log
        bytes_accessed=n_pad * c * itemsize + n_pad * 4 + 8,
    )

    partials = pl.pallas_call(
        kernel,
        out_shape=jax.ShapeDtypeStruct((2, 1, 1), jnp.float32),
        grid_spec=pltpu.PrefetchScalarGridSpec(
            num_scalar_prefetch=0,
            grid=(2, tiles_per_core),
            in_specs=[
                pl.BlockSpec((tile_n, c), lambda p, i: (p * tiles_per_core + i, 0)),
                pl.BlockSpec((tile_n, 1), lambda p, i: (p * tiles_per_core + i, 0)),
            ],
            out_specs=pl.BlockSpec((1, 1, 1), lambda p, i: (p, 0, 0)),
            scratch_shapes=[pltpu.VMEM((1, 1), jnp.float32)],   # per-core running sum
        ),
        compiler_params=pltpu.CompilerParams(
            # Row-shard axis is parallel (v7x dual-core); the accumulator axis
            # must stay "arbitrary".
            dimension_semantics=("parallel", "arbitrary"),
            vmem_limit_bytes=vmem_limit,
        ),
        cost_estimate=cost,
    )(logits, targets2d)

    return jnp.sum(partials) * jnp.float32(scale)


def focal_loss_ref(logits, targets, alpha: float = 1.0, gamma: float = 2.0,
                   reduction: str = "mean"):
    """Pure-JAX reference matching F.cross_entropy + focal weighting."""
    x = logits.astype(jnp.float32)
    lse = jax.nn.logsumexp(x, axis=-1)
    logit_t = jnp.take_along_axis(x, targets[:, None].astype(jnp.int32), axis=-1)[:, 0]
    ce = lse - logit_t
    pt = jnp.exp(-ce)
    focal = alpha * (1.0 - pt) ** gamma * ce
    if reduction == "mean":
        return jnp.mean(focal)
    if reduction == "sum":
        return jnp.sum(focal)
    return focal


if __name__ == "__main__":
    key = jax.random.PRNGKey(0)
    k1, k2, k3, k4, k5, k6 = jax.random.split(key, 6)

    # Case 1: N divisible by the tile -> exercises both grid axes, no padding.
    N, C = 16, 32
    logits = jax.random.normal(k1, (N, C), dtype=jnp.float32)
    targets = jax.random.randint(k2, (N,), 0, C, dtype=jnp.int32)
    out = jax.block_until_ready(focal_loss(logits, targets, alpha=1.0, gamma=2.0,
                                           tile_n=8))
    ref = focal_loss_ref(logits, targets, alpha=1.0, gamma=2.0)
    assert jnp.allclose(out, ref, rtol=1e-5, atol=1e-5), (out, ref)

    # Case 2: ragged N + alpha != 1 -> padded rows masked in-kernel, mean / true N.
    N2, C2 = 13, 32
    logits2 = jax.random.normal(k3, (N2, C2), dtype=jnp.float32)
    targets2 = jax.random.randint(k4, (N2,), 0, C2, dtype=jnp.int32)
    out2 = jax.block_until_ready(focal_loss(logits2, targets2, alpha=0.25, gamma=2.0,
                                            tile_n=8))
    ref2 = focal_loss_ref(logits2, targets2, alpha=0.25, gamma=2.0)
    assert jnp.allclose(out2, ref2, rtol=1e-5, atol=1e-5), (out2, ref2)

    # Case 3: bf16 logits, auto (byte-based) tile sizing, 'sum' reduction,
    # ragged N with one fully-padded tile on the second shard, integer gamma=3.
    N3, C3 = 300, 40
    logits3 = jax.random.normal(k5, (N3, C3), dtype=jnp.bfloat16)
    targets3 = jax.random.randint(k6, (N3,), 0, C3, dtype=jnp.int32)
    out3 = jax.block_until_ready(focal_loss(logits3, targets3, alpha=1.0, gamma=3.0,
                                            reduction="sum"))
    ref3 = focal_loss_ref(logits3, targets3, alpha=1.0, gamma=3.0, reduction="sum")
    assert jnp.allclose(out3, ref3, rtol=5e-4, atol=1e-2), (out3, ref3)

    print("KERNEL_OK")
</pallas_src>

<mosaic_0001>
module attributes {stable_mosaic.version = 11 : i64} {
  func.func @_focal_loss_kernel(%arg0: i32, %arg1: i32, %arg2: memref<8x32xf32, #tpu.memory_space<vmem>>, %arg3: memref<8x1xi32, #tpu.memory_space<vmem>>, %arg4: memref<1x1x1xf32, #tpu.memory_space<vmem>>, %arg5: memref<1x1xf32, #tpu.memory_space<vmem>>) attributes {dimension_semantics = [#tpu.dimension_semantics<parallel>, #tpu.dimension_semantics<arbitrary>], iteration_bounds = array<i64: 2, 1>, scalar_prefetch = 0 : i64, scratch_operands = 1 : i64, tpu.core_type = #tpu.core_type<tc>, window_params = [{transform_indices = @transform_0, window_bounds = array<i64: 8, 32>}, {transform_indices = @transform_1, window_bounds = array<i64: 8, 1>}, {transform_indices = @transform_2, window_bounds = array<i64: 1, 1, 1>}]} {
    %c0_i32 = arith.constant 0 : i32
    %0 = arith.cmpi eq, %arg1, %c0_i32 : i32
    %1 = arith.extui %0 : i1 to i32
    %c0_i32_0 = arith.constant 0 : i32
    %2 = arith.cmpi ne, %1, %c0_i32_0 : i32
    scf.if %2 {
      %cst_20 = arith.constant 0.000000e+00 : f32
      %48 = vector.broadcast %cst_20 : f32 to vector<1x1xf32>
      %c0_21 = arith.constant 0 : index
      %c0_22 = arith.constant 0 : index
      %49 = vector.load %arg5[%c0_21, %c0_22] : memref<1x1xf32, #tpu.memory_space<vmem>>, vector<1x1xf32>
      tpu.vector_store %arg5[%c0_21, %c0_22], %48 {strides = array<i32>} : memref<1x1xf32, #tpu.memory_space<vmem>>, vector<1x1xf32>,
    } else {
    }
    %c0 = arith.constant 0 : index
    %c0_1 = arith.constant 0 : index
    %3 = vector.load %arg5[%c0, %c0_1] : memref<1x1xf32, #tpu.memory_space<vmem>>, vector<1x1xf32>
    %c0_2 = arith.constant 0 : index
    %c0_3 = arith.constant 0 : index
    %4 = vector.load %arg2[%c0_2, %c0_3] : memref<8x32xf32, #tpu.memory_space<vmem>>, vector<8x32xf32>
    %c0_4 = arith.constant 0 : index
    %c0_5 = arith.constant 0 : index
    %5 = vector.load %arg3[%c0_4, %c0_5] : memref<8x1xi32, #tpu.memory_space<vmem>>, vector<8x1xi32>
    %cst = arith.constant dense<0xFF800000> : vector<8xf32>
    %6 = vector.multi_reduction <maximumf>, %4, %cst [1] : vector<8x32xf32> to vector<8xf32>
    %7 = vector.shape_cast %6 : vector<8xf32> to vector<8x1xf32>
    %8 = vector.broadcast %7 : vector<8x1xf32> to vector<8x32xf32>
    %9 = arith.subf %4, %8 : vector<8x32xf32>
    %10 = math.exp %9 : vector<8x32xf32>
    %cst_6 = arith.constant dense<0.000000e+00> : vector<8xf32>
    %11 = vector.multi_reduction <add>, %10, %cst_6 [1] : vector<8x32xf32> to vector<8xf32>
    %12 = vector.shape_cast %11 : vector<8xf32> to vector<8x1xf32>
    %13 = math.log %12 : vector<8x1xf32>
    %14 = arith.addf %13, %7 : vector<8x1xf32>
    %15 = tpu.iota {dimensions = array<i32: 1>} : vector<8x32xi32>
    %16 = vector.broadcast %5 : vector<8x1xi32> to vector<8x32xi32>
    %17 = arith.cmpi eq, %15, %16 : vector<8x32xi32>
    %cst_7 = arith.constant 0.000000e+00 : f32
    %18 = vector.broadcast %cst_7 : f32 to vector<8x32xf32>
    %19 = arith.select %17, %4, %18 : vector<8x32xi1>, vector<8x32xf32>
    %cst_8 = arith.constant dense<0.000000e+00> : vector<8xf32>
    %20 = vector.multi_reduction <add>, %19, %cst_8 [1] : vector<8x32xf32> to vector<8xf32>
    %21 = vector.shape_cast %20 : vector<8xf32> to vector<8x1xf32>
    %22 = arith.subf %14, %21 : vector<8x1xf32>
    %cst_9 = arith.constant 0.000000e+00 : f32
    %23 = vector.broadcast %cst_9 : f32 to vector<8x1xf32>
    %24 = arith.maximumf %22, %23 : vector<8x1xf32>
    %cst_10 = arith.constant 0.000000e+00 : f32
    %25 = vector.broadcast %cst_10 : f32 to vector<8x1xf32>
    %26 = arith.subf %25, %24 : vector<8x1xf32>
    %27 = math.exp %26 : vector<8x1xf32>
    %cst_11 = arith.constant 1.000000e+00 : f32
    %28 = vector.broadcast %cst_11 : f32 to vector<8x1xf32>
    %29 = arith.subf %28, %27 : vector<8x1xf32>
    %cst_12 = arith.constant 0.000000e+00 : f32
    %cst_13 = arith.constant 1.000000e+00 : f32
    %30 = vector.broadcast %cst_12 : f32 to vector<8x1xf32>
    %31 = arith.maximumf %30, %29 : vector<8x1xf32>
    %32 = vector.broadcast %cst_13 : f32 to vector<8x1xf32>
    %33 = arith.minimumf %32, %31 : vector<8x1xf32>
    %cst_14 = arith.constant 1.000000e+00 : f32
    %34 = vector.broadcast %cst_14 : f32 to vector<8x1xf32>
    %35 = arith.mulf %34, %33 : vector<8x1xf32>
    %36 = arith.mulf %35, %33 : vector<8x1xf32>
    %37 = arith.mulf %36, %24 : vector<8x1xf32>
    %38 = vector.shape_cast %37 : vector<8x1xf32> to vector<1x8x1xf32>
    %cst_15 = arith.constant dense<0.000000e+00> : vector<1xf32>
    %39 = vector.multi_reduction <add>, %38, %cst_15 [1, 2] : vector<1x8x1xf32> to vector<1xf32>
    %40 = vector.shape_cast %39 : vector<1xf32> to vector<1x1x1xf32>
    %41 = vector.extract %40[0, 0, 0] : f32 from vector<1x1x1xf32>
    %42 = vector.broadcast %41 : f32 to vector<1x1xf32>
    %43 = arith.addf %3, %42 : vector<1x1xf32>
    %c0_16 = arith.constant 0 : index
    %c0_17 = arith.constant 0 : index
    %44 = vector.load %arg5[%c0_16, %c0_17] : memref<1x1xf32, #tpu.memory_space<vmem>>, vector<1x1xf32>
    tpu.vector_store %arg5[%c0_16, %c0_17], %43 {strides = array<i32>} : memref<1x1xf32, #tpu.memory_space<vmem>>, vector<1x1xf32>,
    %c0_i32_18 = arith.constant 0 : i32
    %45 = arith.cmpi eq, %arg1, %c0_i32_18 : i32
    %46 = arith.extui %45 : i1 to i32
    %c0_i32_19 = arith.constant 0 : i32
    %47 = arith.cmpi ne, %46, %c0_i32_19 : i32
    scf.if %47 {
      %c0_20 = arith.constant 0 : index
      %c0_21 = arith.constant 0 : index
      %48 = vector.load %arg5[%c0_20, %c0_21] : memref<1x1xf32, #tpu.memory_space<vmem>>, vector<1x1xf32>
      %49 = vector.shape_cast %48 : vector<1x1xf32> to vector<1x1x1xf32>
      %c0_22 = arith.constant 0 : index
      %c0_23 = arith.constant 0 : index
      %c0_24 = arith.constant 0 : index
      %50 = vector.load %arg4[%c0_22, %c0_23, %c0_24] : memref<1x1x1xf32, #tpu.memory_space<vmem>>, vector<1x1x1xf32>
      tpu.vector_store %arg4[%c0_22, %c0_23, %c0_24], %49 {strides = array<i32>} : memref<1x1x1xf32, #tpu.memory_space<vmem>>, vector<1x1x1xf32>,
    } else {
    }
    return
  }
  func.func @transform_0(%arg0: i32, %arg1: i32) -> (i32, i32) {
    %c1_i32 = arith.constant 1 : i32
    %0 = arith.muli %arg0, %c1_i32 : i32
    %1 = arith.addi %0, %arg1 : i32
    %c0_i32 = arith.constant 0 : i32
    %c0_i32_0 = arith.constant 0 : i32
    return %1, %c0_i32 : i32, i32
  }
  func.func @transform_1(%arg0: i32, %arg1: i32) -> (i32, i32) {
    %c1_i32 = arith.constant 1 : i32
    %0 = arith.muli %arg0, %c1_i32 : i32
    %1 = arith.addi %0, %arg1 : i32
    %c0_i32 = arith.constant 0 : i32
    %c0_i32_0 = arith.constant 0 : i32
    return %1, %c0_i32 : i32, i32
  }
  func.func @transform_2(%arg0: i32, %arg1: i32) -> (i32, i32, i32) {
    %c0_i32 = arith.constant 0 : i32
    %c0_i32_0 = arith.constant 0 : i32
    %c0_i32_1 = arith.constant 0 : i32
    return %arg0, %c0_i32, %c0_i32_0 : i32, i32, i32
  }
}

</mosaic_0001>

<bundles_post_ra>
// kernel: tpu_custom_call.1
= control target key start
LH: loop header
LB: loop body
LE: loop exit
PB: predicated region body
PF: predicated region fallthrough
CT: control target
= control target key end

     0   :  { %s394_s9 = smov 0   ;;  %s396_s10 = smov 0   ;;  %s440_s0 = inlined_call_operand.vmem [shape: f32[16,32], index: 0, kind: input, shape index: {}]   ;;  %s441_s1 = inlined_call_operand.vmem [shape: s32[16,1], index: 1, kind: input, shape index: {}]   ;;  %s442_s2 = inlined_call_operand.vmem [shape: f32[2,1,1], index: 2, kind: output, shape index: {}]  }
   0x1   :  { %s398_s11 = smov 0  }
   0x2 LB: > { %s24_s12 = sadd.s32 1, %s371_s10  ;;  %p313_p0 = scmp.ge.s32.totalorder %s375_s11, 1  ;;  %s375_s11 = sphi %s398_s11, %s12_s11   ;;  %s371_s10 = sphi %s396_s10, %s444_s10   ;;  %s367_s9 = sphi %s394_s9, %s443_s9  }
   0x3   : > { %p26_p1 = scmp.ge.s32.totalorder %s24_s12, 2  ;;  %p140_p2 = scmp.lt.s32.totalorder %s375_s11, 3 }
   0x5   : > { %s446_s12 = smov (%p26_p1, %s24_s12), 0  ;;  %p141_p3 = pnand %p313_p0, %p140_p2 }
   0x6   : > { %p166_p4 = scmp.lt.s32.totalorder (!%p141_p3), %s367_s9, 1 }
   0x7   : > { %144 = sbr.rel (%p141_p3) target bundleno = 488 (0x1e8), region = 28 }
   0xc   : > { %v377_v0 = vmov 0   ;;  %s448_s9 = smov (!%p166_p4, %s367_s9), 1  ;;  %vm189_vm0 = vcmask 261120   ;;  %v202_v9 = vlaneseq  ;;  %vm222_vm2 = vcmask 7168  }
   0xd   : > { %346 = vset.pattern.permute.xlu0 %v377_v0  ;;  %s314_s13 = sshll.u32 %s448_s9, 3  ;;  %vm184_vm3 = vcmask 0   ;;  %v378_v30 = vmov 0.0   ;;  %s179_s23 = scalar_lea.vmem %s442_s2, %s448_s9 }
   0xe   : > { %s169_s16 = scalar_lea.vmem %s440_s0, %s314_s13  ;;  %s175_s19 = scalar_lea.vmem %s441_s1, %s314_s13  ;;  %v203_v10 = vand.u32 127, %v202_v9  ;;  %185 = vst.msk [vmem:[#allocation2] sm:$0x1] %vm184_vm3, %v378_v30 }
   0xf   : > { %v187_v1 = vld [vmem:[%s169_s16] sm:$0xff] }
  0x10   : > { %v190_v2 = vsel %vm189_vm0, %v187_v1, -inf  ;;  %v188_v3 = vld [vmem:[%s175_s19] sm:$0xff] }
  0x11   : > { %191 = vmax.xlane.f32.xlu0 %v190_v2 }
  0x15   : > { %v186_v38 = vld [vmem:[#allocation2] sm:$0x1] }
  0x25   : > { %205 = vperm.xlu0 %346, %v188_v3  }
  0x84   : > { %v192_v4 = vpop.xlane.xlu0 %191 }
  0x85   : > { %v193_v5 = vsub.f32 %v187_v1, %v192_v4 }
  0x87   : > { %v194_v6 = vmul.f32 1.442695, %v193_v5 }
  0x89   : > { %347 = vpow2.f32 %v194_v6 }
  0x8f   : > { %v348_v7 = vpop.eup %347 }
  0x90   : > { %v196_v8 = vsel %vm189_vm0, %v348_v7, 0.0 }
  0x91   : > { %197 = vadd.xlane.f32.xlu1 %v196_v8 }
  0x97   : > { %v206_v11 = vpop.permute.xlu0 %205 }
  0x98   : > { %vm207_vm1 = vcmp.eq.s32.totalorder %v203_v10, %v206_v11 }
  0x99   : > { %v208_v12 = vsel %vm207_vm1, %v187_v1, 0.0 }
  0x9a   : > { %v209_v13 = vsel %vm189_vm0, %v208_v12, 0.0 }
  0x9b   : > { %210 = vadd.xlane.f32.xlu1 %v209_v13 }
 0x104   : > { %v198_v14 = vpop.xlane.xlu1 %197 }
 0x105   : > { %349 = vlog2.f32 %v198_v14 }
 0x10b   : > { %v350_v15 = vpop.eup %349 }
 0x10c   : > { %v200_v16 = vmul.f32 0.6931472, %v350_v15 }
 0x10e   : > { %v201_v17 = vadd.f32 %v200_v16, %v192_v4  ;;  %v211_v18 = vpop.xlane.xlu1 %210 }
 0x110   : > { %v212_v19 = vsub.f32 %v201_v17, %v211_v18 }
 0x112   : > { %v213_v20 = vmax.f32 %v212_v19, 0.0 }
 0x114   : > { %v214_v21 = vsub.f32 0.0, %v213_v20 }
 0x116   : > { %v215_v22 = vmul.f32 1.442695, %v214_v21 }
 0x118   : > { %351 = vpow2.f32 %v215_v22 }
 0x11e   : > { %v352_v23 = vpop.eup %351 }
 0x11f   : > { %v217_v24 = vsub.f32 1.0, %v352_v23 }
 0x121   : > { %v218_v25 = vmax.f32 %v217_v24, 0.0 }
 0x123   : > { %v219_v26 = vmin.f32 %v218_v25, 1.0 }
 0x125   : > { %v220_v27 = vmul.f32 %v219_v26, %v219_v26 }
 0x127   : > { %v221_v28 = vmul.f32 %v220_v27, %v213_v20 }
 0x129   : > { %v223_v29 = vsel %vm222_vm2, %v221_v28, 0.0 }
 0x12a   : > { %224 = vadd.xlane.f32.xlu2 %v223_v29 }
 0x19d   : > { %v225_v31 = vpop.xlane.xlu2 %224 }
 0x19e   : > { %v226_v32 = vrot.slane %v225_v31, 4 }
 0x1a0   : > { %v227_v33 = vadd.f32 %v226_v32, %v225_v31 }
 0x1a2   : > { %v228_v34 = vrot.slane %v227_v33, 2 }
 0x1a4   : > { %v229_v35 = vadd.f32 %v228_v34, %v227_v33 }
 0x1a6   : > { %v230_v36 = vrot.slane %v229_v35, 1 }
 0x1a8   : > { %v231_v37 = vadd.f32 %v230_v36, %v229_v35 }
 0x1aa   : > { %318 = vpush %v231_v37 }
 0x1db   : > { %s319_s20 = spop %318 }
 0x1dc   : > { %v233_v39 = vstv %s319_s20 }
 0x1dd   : > { %v234_v40 = vadd.f32 %v233_v39, %v186_v38 }
 0x1df   : > { %236 = vst.msk [vmem:[#allocation2] sm:$0x1] %vm184_vm3, %v234_v40 }
 0x1e6   : > { %v240_v41 = vld [vmem:[#allocation2] sm:$0x1] }
 0x1e7   : > { %241 = vst.msk [vmem:[%s179_s23] sm:$0x1] %vm184_vm3, %v240_v41 }
 0x1e8 PF: > { %s12_s11 = sadd.s32 1, %s375_s11   ;;  %s443_s9 = smov %s371_s10 }
 0x1e9   : > { %p9_p5 = scmp.ge.s32.totalorder %s12_s11, 4   ;;  %s444_s10 = smov %s446_s12 }
 0x1eb   :  { %11 = sbr.rel (!%p9_p5) target bundleno = 2 (0x2), region = 69 }

</bundles_post_ra>
